<compile_context>
chip_gen: v6e
topology: v6e:2x2x1
jax: 0.10.0
libtpu: 0.0.40
codegen_flags: <defaults>
</compile_context>

<pallas_src>
import functools

import jax
import jax.numpy as jnp
from jax import lax
from jax.experimental import pallas as pl
from jax.experimental.pallas import tpu as pltpu

_MXU_CHANNEL_THRESHOLD = 256          # use MXU for the tiny MLP only above this C
_LANE = 128                           # lane width: last block dim multiple
_MIN_GRID_STEPS = 4                   # >=2 pipelined steps per TC on v7x megacore


def se_kernel(x_ref, w1_ref, b1_ref, w2_ref, b2_ref, o_ref, *, use_mxu):
    # ---- Squeeze: global max-pool over the length axis (lane reduce, XLU).
    # Max is exact in bf16, so reduce in the I/O dtype and upcast only the
    # tiny (tb, C) result -- no block-sized f32 temp is kept live.
    y = jnp.max(x_ref[...], axis=-1).astype(jnp.float32)          # (tb, C)

    w1 = w1_ref[...].astype(jnp.float32)                          # (H, C)
    b1 = b1_ref[...].astype(jnp.float32)                          # (1, H)
    w2 = w2_ref[...].astype(jnp.float32)                          # (C, H)
    b2 = b2_ref[...].astype(jnp.float32)                          # (1, C)

    # ---- Excitation MLP.
    # Small C/H: VPU broadcast-multiply + lane reduction beats MXU fill/drain.
    # Large C: MXU dot_general (PyTorch weight layout -> contract last axes).
    if use_mxu:
        h = lax.dot_general(y, w1, (((1,), (1,)), ((), ())),
                            preferred_element_type=jnp.float32)   # (tb, H)
    else:
        h = jnp.sum(y[:, None, :] * w1[None, :, :], axis=-1)      # (tb, H)
    h = h + b1
    h = h * jax.nn.sigmoid(h)                                     # SiLU

    if use_mxu:
        s = lax.dot_general(h, w2, (((1,), (1,)), ((), ())),
                            preferred_element_type=jnp.float32)   # (tb, C)
    else:
        s = jnp.sum(h[:, None, :] * w2[None, :, :], axis=-1)      # (tb, C)
    s = jax.nn.sigmoid(s + b2)                                     # (tb, C)

    # ---- Scale: fused upcast-mul-downcast, lane-dense store (L last dim).
    o_ref[...] = (x_ref[...].astype(jnp.float32) * s[:, :, None]).astype(o_ref.dtype)


def _vmem_capacity_bytes(default=64 * 1024 * 1024):
    try:
        info = pltpu.get_tpu_info()
        return int(getattr(info, "vmem_capacity_bytes", default))
    except Exception:
        return default


def se_layer(x, w1, b1, w2, b2, *, batch_tile=None, donate_x=False):
    """Squeeze-and-Excite gate (SELayer.forward).

    x : (B, C, L)   activations, NCL layout (same as PyTorch). f32 or bf16.
    w1: (H, C)      nn.Linear(oup, hidden).weight (PyTorch layout)
    b1: (H,) / (1,H)  nn.Linear(oup, hidden).bias
    w2: (C, H)      nn.Linear(hidden, oup).weight (PyTorch layout)
    b2: (C,) / (1,C)  nn.Linear(hidden, oup).bias

    donate_x=True aliases x's HBM buffer with the output (the SE output
    replaces its input inside SeqNN) -- only use when x is not needed after.
    """
    B, C, L = x.shape
    H = w1.shape[0]
    if b1.ndim == 1:
        b1 = b1.reshape(1, -1)
    if b2.ndim == 1:
        b2 = b2.reshape(1, -1)
    assert w1.shape == (H, C) and w2.shape == (C, H)
    assert b1.shape == (1, H) and b2.shape == (1, C)

    itemsize = jnp.dtype(x.dtype).itemsize

    # ---- Pad L up to a multiple of 128 so every block is lane-dense
    # (unmasked vst on the store path).  Pad with dtype-min so the max-pool
    # over L is unaffected; the padded columns are sliced away at the end.
    Lp = pl.cdiv(L, _LANE) * _LANE
    if Lp != L:
        pad_val = jnp.finfo(x.dtype).min
        x = jnp.pad(x, ((0, 0), (0, 0), (0, Lp - L)), constant_values=pad_val)

    # ---- VMEM budget per generation (v7x 64 MiB -> 4 MiB blocks,
    # v5e/v6e 128 MiB -> 6 MiB blocks; pipeline footprint ~4-5x one block).
    vmem_cap = _vmem_capacity_bytes()
    per_block_budget = min(6 * 1024 * 1024, vmem_cap // 16)
    vmem_limit = int(min(vmem_cap // 2, 64 * 1024 * 1024))

    per_batch_bytes = C * Lp * itemsize
    if batch_tile is None:
        cap_by_vmem = max(1, int(per_block_budget // per_batch_bytes))
        # Keep >= _MIN_GRID_STEPS grid steps so v7x's two TCs each keep a
        # pipelined multi-step loop (DMA/compute overlap).
        cap_by_grid = max(1, B // _MIN_GRID_STEPS)
        batch_tile = int(max(1, min(cap_by_vmem, cap_by_grid)))
    batch_tile = int(batch_tile)

    # ---- Pad B up to a multiple of batch_tile (no divisibility requirement;
    # avoids silently degrading to tiny tiles for awkward B).
    Bp = pl.cdiv(B, batch_tile) * batch_tile
    if Bp != B:
        x = jnp.pad(x, ((0, Bp - B), (0, 0), (0, 0)))
    grid = (Bp // batch_tile,)

    use_mxu = C >= _MXU_CHANNEL_THRESHOLD

    kwargs = {}
    if donate_x:
        # In/out index_maps are identical per grid step -> safe to alias.
        kwargs["input_output_aliases"] = {0: 0}

    param_bytes = sum(int(a.size) * jnp.dtype(a.dtype).itemsize
                      for a in (w1, b1, w2, b2))
    cost = pl.CostEstimate(
        flops=2 * Bp * C * Lp + 4 * Bp * C * H,
        transcendentals=Bp * (C + H),
        bytes_accessed=2 * Bp * C * Lp * itemsize + param_bytes,
    )

    out = pl.pallas_call(
        functools.partial(se_kernel, use_mxu=use_mxu),
        out_shape=jax.ShapeDtypeStruct((Bp, C, Lp), x.dtype),
        grid_spec=pltpu.PrefetchScalarGridSpec(
            num_scalar_prefetch=0,
            grid=grid,
            in_specs=[
                # x: one (tb, C, Lp) slab per grid step; Lp is a multiple of
                # 128 (lane-dense), C is the full extent.
                pl.BlockSpec((batch_tile, C, Lp), lambda b: (b, 0, 0)),
                # MLP params: constant block index -> DMA'd once, VMEM-resident.
                pl.BlockSpec((H, C), lambda b: (0, 0)),
                pl.BlockSpec((1, H), lambda b: (0, 0)),
                pl.BlockSpec((C, H), lambda b: (0, 0)),
                pl.BlockSpec((1, C), lambda b: (0, 0)),
            ],
            out_specs=pl.BlockSpec((batch_tile, C, Lp), lambda b: (b, 0, 0)),
        ),
        compiler_params=pltpu.CompilerParams(
            # Batch tiles are independent -> parallel (v7x: shard across TCs).
            dimension_semantics=("parallel",),
            vmem_limit_bytes=vmem_limit,
        ),
        cost_estimate=cost,
        **kwargs,
    )(x, w1, b1, w2, b2)

    if Bp != B or Lp != L:
        out = out[:B, :, :L]
    return out


def se_layer_ref(x, w1, b1, w2, b2):
    """Pure-JAX reference matching the PyTorch SELayer.forward (f32 math)."""
    xf = x.astype(jnp.float32)
    y = jnp.max(xf, axis=-1)
    h = y @ w1.astype(jnp.float32).T + b1.astype(jnp.float32).reshape(1, -1)
    h = h * jax.nn.sigmoid(h)
    s = jax.nn.sigmoid(h @ w2.astype(jnp.float32).T + b2.astype(jnp.float32).reshape(1, -1))
    return xf * s[:, :, None]


if __name__ == "__main__":
    # SELayer(inp=16, oup=32, reduction=4) -> hidden = inp // reduction = 4.
    inp, oup, reduction = 16, 32, 4
    hidden = inp // reduction
    C = oup

    key = jax.random.PRNGKey(0)
    kx, kw1, kb1, kw2, kb2, kx2 = jax.random.split(key, 6)

    # nn.Linear(oup, hidden): weight (hidden, oup), bias (hidden,)
    w1 = jax.random.normal(kw1, (hidden, C), dtype=jnp.float32) * 0.1
    b1 = jax.random.normal(kb1, (1, hidden), dtype=jnp.float32) * 0.1
    # nn.Linear(hidden, oup): weight (oup, hidden), bias (oup,)
    w2 = jax.random.normal(kw2, (C, hidden), dtype=jnp.float32) * 0.1
    b2 = jax.random.normal(kb2, (1, C), dtype=jnp.float32) * 0.1

    # ---- Test 1: f32 I/O, L multiple of 128, auto batch_tile (grid = 4).
    B, L = 4, 256
    x = jax.random.normal(kx, (B, C, L), dtype=jnp.float32)
    out = jax.block_until_ready(se_layer(x, w1, b1, w2, b2))
    ref = se_layer_ref(x, w1, b1, w2, b2)
    assert out.shape == (B, C, L)
    assert jnp.allclose(out, ref, atol=1e-5, rtol=1e-5), "f32 mismatch vs reference"

    # ---- Test 2: awkward shapes (B=3, L=200) -> exercises B/L padding path.
    B2, L2 = 3, 200
    x2 = jax.random.normal(kx2, (B2, C, L2), dtype=jnp.float32)
    out2 = jax.block_until_ready(se_layer(x2, w1, b1, w2, b2))
    ref2 = se_layer_ref(x2, w1, b1, w2, b2)
    assert out2.shape == (B2, C, L2)
    assert jnp.allclose(out2, ref2, atol=1e-5, rtol=1e-5), "padded mismatch vs reference"

    # ---- Test 3: bf16 I/O (halves HBM bytes); f32 math inside the kernel.
    x3 = x.astype(jnp.bfloat16)
    ref3 = se_layer_ref(x3, w1, b1, w2, b2)      # f32 math on bf16 inputs
    out3 = jax.block_until_ready(se_layer(x3, w1, b1, w2, b2))
    assert out3.dtype == jnp.bfloat16
    assert jnp.allclose(out3.astype(jnp.float32), ref3, atol=2e-2, rtol=2e-2), \
        "bf16 mismatch vs reference"

    print("KERNEL_OK")
</pallas_src>

<mosaic_0001>
module attributes {stable_mosaic.version = 11 : i64} {
  func.func @se_kernel(%arg0: i32, %arg1: memref<1x32x256xf32, #tpu.memory_space<vmem>>, %arg2: memref<4x32xf32, #tpu.memory_space<vmem>>, %arg3: memref<1x4xf32, #tpu.memory_space<vmem>>, %arg4: memref<32x4xf32, #tpu.memory_space<vmem>>, %arg5: memref<1x32xf32, #tpu.memory_space<vmem>>, %arg6: memref<1x32x256xf32, #tpu.memory_space<vmem>>) attributes {dimension_semantics = [#tpu.dimension_semantics<parallel>], iteration_bounds = array<i64: 4>, scalar_prefetch = 0 : i64, scratch_operands = 0 : i64, tpu.core_type = #tpu.core_type<tc>, window_params = [{transform_indices = @transform_0, window_bounds = array<i64: 1, 32, 256>}, {pipeline_mode = #tpu.pipeline_mode<synchronous>, transform_indices = @transform_1, window_bounds = array<i64: 4, 32>}, {pipeline_mode = #tpu.pipeline_mode<synchronous>, transform_indices = @transform_2, window_bounds = array<i64: 1, 4>}, {pipeline_mode = #tpu.pipeline_mode<synchronous>, transform_indices = @transform_3, window_bounds = array<i64: 32, 4>}, {pipeline_mode = #tpu.pipeline_mode<synchronous>, transform_indices = @transform_4, window_bounds = array<i64: 1, 32>}, {transform_indices = @transform_5, window_bounds = array<i64: 1, 32, 256>}]} {
    %c0 = arith.constant 0 : index
    %c0_0 = arith.constant 0 : index
    %c0_1 = arith.constant 0 : index
    %0 = vector.load %arg1[%c0, %c0_0, %c0_1] : memref<1x32x256xf32, #tpu.memory_space<vmem>>, vector<1x32x256xf32>
    %cst = arith.constant dense<0xFF800000> : vector<1x32xf32>
    %1 = vector.multi_reduction <maximumf>, %0, %cst [2] : vector<1x32x256xf32> to vector<1x32xf32>
    %c0_2 = arith.constant 0 : index
    %c0_3 = arith.constant 0 : index
    %2 = vector.load %arg2[%c0_2, %c0_3] : memref<4x32xf32, #tpu.memory_space<vmem>>, vector<4x32xf32>
    %c0_4 = arith.constant 0 : index
    %c0_5 = arith.constant 0 : index
    %3 = vector.load %arg3[%c0_4, %c0_5] : memref<1x4xf32, #tpu.memory_space<vmem>>, vector<1x4xf32>
    %c0_6 = arith.constant 0 : index
    %c0_7 = arith.constant 0 : index
    %4 = vector.load %arg4[%c0_6, %c0_7] : memref<32x4xf32, #tpu.memory_space<vmem>>, vector<32x4xf32>
    %c0_8 = arith.constant 0 : index
    %c0_9 = arith.constant 0 : index
    %5 = vector.load %arg5[%c0_8, %c0_9] : memref<1x32xf32, #tpu.memory_space<vmem>>, vector<1x32xf32>
    %6 = vector.shape_cast %1 : vector<1x32xf32> to vector<1x1x32xf32>
    %7 = vector.shape_cast %2 : vector<4x32xf32> to vector<1x4x32xf32>
    %8 = vector.broadcast %6 : vector<1x1x32xf32> to vector<1x4x32xf32>
    %9 = arith.mulf %8, %7 : vector<1x4x32xf32>
    %cst_10 = arith.constant dense<0.000000e+00> : vector<1x4xf32>
    %10 = vector.multi_reduction <add>, %9, %cst_10 [2] : vector<1x4x32xf32> to vector<1x4xf32>
    %11 = arith.addf %10, %3 : vector<1x4xf32>
    %12 = arith.negf %11 : vector<1x4xf32>
    %13 = math.exp %12 : vector<1x4xf32>
    %cst_11 = arith.constant 1.000000e+00 : f32
    %14 = vector.broadcast %cst_11 : f32 to vector<1x4xf32>
    %15 = arith.addf %14, %13 : vector<1x4xf32>
    %16 = arith.divf %14, %15 : vector<1x4xf32>
    %17 = arith.mulf %11, %16 : vector<1x4xf32>
    %18 = vector.shape_cast %17 : vector<1x4xf32> to vector<1x1x4xf32>
    %19 = vector.shape_cast %4 : vector<32x4xf32> to vector<1x32x4xf32>
    %20 = vector.broadcast %18 : vector<1x1x4xf32> to vector<1x32x4xf32>
    %21 = arith.mulf %20, %19 : vector<1x32x4xf32>
    %cst_12 = arith.constant dense<0.000000e+00> : vector<1x32xf32>
    %22 = vector.multi_reduction <add>, %21, %cst_12 [2] : vector<1x32x4xf32> to vector<1x32xf32>
    %23 = arith.addf %22, %5 : vector<1x32xf32>
    %24 = arith.negf %23 : vector<1x32xf32>
    %25 = math.exp %24 : vector<1x32xf32>
    %cst_13 = arith.constant 1.000000e+00 : f32
    %26 = vector.broadcast %cst_13 : f32 to vector<1x32xf32>
    %27 = arith.addf %26, %25 : vector<1x32xf32>
    %28 = arith.divf %26, %27 : vector<1x32xf32>
    %c0_14 = arith.constant 0 : index
    %c0_15 = arith.constant 0 : index
    %c0_16 = arith.constant 0 : index
    %29 = vector.load %arg1[%c0_14, %c0_15, %c0_16] : memref<1x32x256xf32, #tpu.memory_space<vmem>>, vector<1x32x256xf32>
    %30 = vector.shape_cast %28 : vector<1x32xf32> to vector<1x32x1xf32>
    %31 = vector.broadcast %30 : vector<1x32x1xf32> to vector<1x32x256xf32>
    %32 = arith.mulf %29, %31 : vector<1x32x256xf32>
    %c0_17 = arith.constant 0 : index
    %c0_18 = arith.constant 0 : index
    %c0_19 = arith.constant 0 : index
    %33 = vector.load %arg6[%c0_17, %c0_18, %c0_19] : memref<1x32x256xf32, #tpu.memory_space<vmem>>, vector<1x32x256xf32>
    tpu.vector_store %arg6[%c0_17, %c0_18, %c0_19], %32 {strides = array<i32>} : memref<1x32x256xf32, #tpu.memory_space<vmem>>, vector<1x32x256xf32>,
    return
  }
  func.func @transform_0(%arg0: i32) -> (i32, i32, i32) {
    %c0_i32 = arith.constant 0 : i32
    %c0_i32_0 = arith.constant 0 : i32
    %c0_i32_1 = arith.constant 0 : i32
    return %arg0, %c0_i32, %c0_i32_0 : i32, i32, i32
  }
  func.func @transform_1(%arg0: i32) -> (i32, i32) {
    %c0_i32 = arith.constant 0 : i32
    %c0_i32_0 = arith.constant 0 : i32
    %c0_i32_1 = arith.constant 0 : i32
    return %c0_i32, %c0_i32_0 : i32, i32
  }
  func.func @transform_2(%arg0: i32) -> (i32, i32) {
    %c0_i32 = arith.constant 0 : i32
    %c0_i32_0 = arith.constant 0 : i32
    %c0_i32_1 = arith.constant 0 : i32
    return %c0_i32, %c0_i32_0 : i32, i32
  }
  func.func @transform_3(%arg0: i32) -> (i32, i32) {
    %c0_i32 = arith.constant 0 : i32
    %c0_i32_0 = arith.constant 0 : i32
    %c0_i32_1 = arith.constant 0 : i32
    return %c0_i32, %c0_i32_0 : i32, i32
  }
  func.func @transform_4(%arg0: i32) -> (i32, i32) {
    %c0_i32 = arith.constant 0 : i32
    %c0_i32_0 = arith.constant 0 : i32
    %c0_i32_1 = arith.constant 0 : i32
    return %c0_i32, %c0_i32_0 : i32, i32
  }
  func.func @transform_5(%arg0: i32) -> (i32, i32, i32) {
    %c0_i32 = arith.constant 0 : i32
    %c0_i32_0 = arith.constant 0 : i32
    %c0_i32_1 = arith.constant 0 : i32
    return %arg0, %c0_i32, %c0_i32_0 : i32, i32, i32
  }
}

</mosaic_0001>

<bundles_post_ra>
// kernel: tpu_custom_call.1
= control target key start
LH: loop header
LB: loop body
LE: loop exit
PB: predicated region body
PF: predicated region fallthrough
CT: control target
= control target key end

     0   :  { %10 = vsyncpa [#allocation3], 0  ;;  %s1991_s0 = inlined_call_operand.hbm [shape: f32[4,32,256], index: 0, kind: input, shape index: {}]   ;;  %s1992_s1 = inlined_call_operand.vmem [shape: f32[4,32], index: 1, kind: input, shape index: {}]   ;;  %s1993_s2 = inlined_call_operand.vmem [shape: f32[1,4], index: 2, kind: input, shape index: {}]   ;;  %s1994_s3 = inlined_call_operand.vmem [shape: f32[32,4], index: 3, kind: input, shape index: {}]   ;;  %s1995_s4 = inlined_call_operand.vmem [shape: f32[1,32], index: 4, kind: input, shape index: {}]   ;;  %s1996_s5 = inlined_call_operand.hbm [shape: f32[4,32,256], index: 5, kind: output, shape index: {}]  }
   0x1   :  { %12 = vsyncpa [#allocation3 + $0x1], 0 }
   0x2   :  { %13 = vsyncpa [#allocation4], 0 }
   0x3   :  { %15 = vsyncpa [#allocation4 + $0x1], 0  ;;  %s1554_s18 = smov 0   ;;  %s1556_s19 = smov 0  }
   0x4   :  { %s1558_s20 = smov 0   ;;  %s1560_s21 = smov 0  }
   0x5 LB: > { %s1575_s22 = sadd.s32 4294967295, %s1515_s21   ;;  %s1327_s23 = sadd.s32 4294967294, %s1515_s21   ;;  %s1515_s21 = sphi %s1560_s21, %s2010_s21   ;;  %s1511_s20 = sphi %s1558_s20, %s2009_s20   ;;  %s1507_s19 = sphi %s1556_s19, %s2008_s19   ;;  %s1503_s18 = sphi %s1554_s18, %s2007_s18  }
   0x6   : > { %s1579_s24 = sadd.s32 1, %s1515_s21   ;;  %s28_s25 = sadd.s32 1, %s1511_s20 }
   0x7   : > { %s25_s26 = ssub.s32 %s1515_s21, %s1579_s24  ;;  %p35_p0 = scmp.ne.s32.totalorder %s1511_s20, %s1507_s19 }
   0x8   : > { %p26_p1 = scmp.eq.s32.totalorder %s25_s26, 0  ;;  %p36_p2 = scmp.eq.s32.totalorder %s1515_s21, 0 }
   0x9   : > { %p41_p3 = scmp.ne.s32.totalorder %s1507_s19, %s1503_s18  ;;  %p42_p4 = scmp.eq.s32.totalorder %s1575_s22, 0 }
   0xa   : > { %s1591_s27 = scalar_select %p26_p1, %s1511_s20, %s28_s25  }
   0xb   : > { %p1593_p5 = por %p36_p2, %p35_p0  ;;  %p1597_p6 = por %p42_p4, %p41_p3 }
   0xc   : > { %p149_p7 = scmp.eq.s32.totalorder %s1575_s22, 3  ;;  %p155_p8 = scmp.eq.s32.totalorder %s1327_s23, 3 }
   0xd   : > { %s2000_s29 = scalar_select %p1597_p6, 1, 0 }
   0xe   : > { %p1362_p9 = scmp.lt.s32.totalorder %s1515_s21, 4  ;;  %p1603_p10 = por %p149_p7, %p35_p0 }
   0xf   : > { %p1607_p11 = por %p155_p8, %p41_p3  ;;  %s187_s7 = sand.u32 1, %s1511_s20  }
  0x10   : > { %s2001_s30 = scalar_select %p1603_p10, 1, 0 }
  0x11   : > { %s2002_s6 = scalar_select %p1607_p11, 1, 0 }
  0x12   : > { %s1348_s8 = sshll.u32 %s1515_s21, 10  ;;  %s1330_s9 = sshll.u32 %s187_s7, 6 }
  0x13   : > { %s1616_s12 = scalar_lea.hbm %s1991_s0, %s1348_s8  ;;  %s191_s13 = scalar_lea.vmem [#allocation2], %s1330_s9 }
  0x14   : > { %s198_s14 = sshll.u32 %s191_s13, 4  ;;  %p1620_p12 = pnand %p1362_p9, %p1593_p5  ;;  %s1624_s14 = int_to_ptr.vmem [resolvable:$true] %s198_s14 }
  0x15   : > { %s1626_s16 = scalar_lea.sflag [#allocation3], %s187_s7  ;;  %s1423_s17 = scalar_lea.hbm %s1616_s12, 1024 }
  0x16   : > { %p1424_p13 = scmp.ne.s32.totalorder %s1616_s12, %s1423_s17  ;;  %p1425_p0 = pneg %p1620_p12 }
  0x17   : > { %s1428_s26 = scalar_lea.hbm %s1991_s0, 4096  ;;  %p1429_p3 = scmp.lt.s32.totalorder %s1616_s12, %s1991_s0 }
  0x18   : > { %p1426_p1 = pnand %p1425_p0, %p1424_p13  ;;  %p1430_p4 = scmp.lt.s32.totalorder %s1428_s26, %s1423_s17 }
  0x1a   : > { %p1427_p2 = pneg %p1426_p1  ;;  %p1431_p5 = por %p1430_p4, %p1429_p3 }
  0x1c   : > { %p1432_p7 = pnand %p1431_p5, %p1427_p2 }
  0x1e   : > { %1435 = shalt.err (!%p1432_p7)
}
  0x1f   : > { %s1436_s7 = scalar_lea.vmem %s1624_s14, 1024  ;;  %s1517_s9 = smov [#allocation2]  }
  0x20   : > { %p1437_p8 = scmp.ne.s32.totalorder %s1624_s14, %s1436_s7  ;;  %s1441_s10 = sshll.u32 %s1517_s9, 4  ;;  %s1442_s10 = int_to_ptr.vmem [resolvable:$false] %s1441_s10 }
  0x21   : > { %s1443_s11 = scalar_lea.vmem %s1442_s10, 2048  ;;  %p1444_p1 = scmp.lt.s32.totalorder %s1624_s14, %s1442_s10 }
  0x22   : > { %p1439_p9 = pnand %p1437_p8, %p1425_p0  ;;  %p1445_p11 = scmp.lt.s32.totalorder %s1443_s11, %s1436_s7 }
  0x24   : > { %p1440_p13 = pneg %p1439_p9  ;;  %p1446_p10 = por %p1445_p11, %p1444_p1 }
  0x26   : > { %p1447_p6 = pnand %p1446_p10, %p1440_p13 }
  0x28   : > { %1450 = shalt.err (!%p1447_p6)
}
  0x29   : > { %s1518_s13 = smov 256   ;;  %s1519_s17 = smov 16  }
  0x2a   : > { %1357 = dma.hbm_to_vmem [thread:$0]  (!%p1620_p12), %s1616_s12, 1024, %s1624_s14, %s1626_s16, %s1518_s13, %s1518_s13, %s1519_s17  }
  0x2b   : > { %p1333_p0 = scmp.ge.s32.totalorder %s1515_s21, 1  ;;  %p206_p2 = scmp.lt.s32.totalorder %s1515_s21, 5 }
  0x2d   : > { %p207_p3 = pnand %p1333_p0, %p206_p2 }
  0x2e   : > { %s1650_s23 = sand.u32 (!%p207_p3), 1, %s1507_s19   ;;  %p2004_p6 = scmp.ne.s32.totalorder (!%p207_p3), %s2000_s29, 0 }
  0x2f   : > { %210 = sbr.rel (%p207_p3) target bundleno = 1046 (0x416), region = 40  ;;  %s1334_s25 = sshll.u32 (!%p207_p3), %s1650_s23, 6 }
  0x30   : > { %s213_s26 = scalar_lea.sflag (!%p207_p3), [#allocation3], %s1650_s23  ;;  %s216_s28 = scalar_lea.vmem (!%p207_p3), [#allocation2], %s1334_s25 }
  0x34   : > { %1494 = dma.done.wait (%p2004_p6), %s213_s26, 1024  }
  0x35   : > { %1496 = vsyncadd (%p2004_p6), %s213_s26, 4294966272  ;;  %v1660_v0 = vld [vmem:[%s216_s28 + $0x20] sm:$0xff]  ;;  %v1662_v1 = vld [vmem:[%s216_s28 + $0x28] sm:$0xff]  ;;  %v271_v12 = vlaneseq  ;;  %v1520_v18 = vmov 0   ;;  %vm454_vm0 = vcmask 130112   ;;  %vm461_vm1 = vcmask 195712  }
  0x36   : > { %v1664_v2 = vld [vmem:[%s216_s28] sm:$0xff]  ;;  %v257_v3 = vmax.f32 %v1660_v0, %v1662_v1  ;;  %v1668_v4 = vld [vmem:[%s216_s28 + $0x8] sm:$0xff]  ;;  %v1670_v5 = vld [vmem:[%s216_s28 + $0x30] sm:$0xff]  ;;  %1402 = vset.pattern.permute.xlu1 %v1520_v18  ;;  %1401 = vset.pattern.permute.xlu0 %v1520_v18  ;;  %vm468_vm2 = vcmask 261312   ;;  %vm527_vm3 = vcmask 1041409   ;;  %vm529_vm4 = vcmask 1042434  }
  0x37   : > { %v1672_v6 = vld [vmem:[%s216_s28 + $0x38] sm:$0xff]  ;;  %v251_v7 = vmax.f32 %v1664_v2, %v1668_v4  ;;  %v1676_v8 = vld [vmem:[%s216_s28 + $0x10] sm:$0xff]  ;;  %v1685_v13 = vshrl.u32 %v271_v12, 7  ;;  %v263_v15 = vld [vmem:[%s1992_s1] sm:$0xf]  ;;  %vm531_vm5 = vcmask 1043459  }
  0x38   : > { %v1678_v9 = vld [vmem:[%s216_s28 + $0x18] sm:$0xff]  ;;  %258 = vmax.xlane.f32.xlu1 %v257_v3  ;;  %v260_v10 = vmax.f32 %v1670_v5, %v1672_v6  ;;  %v1709_v56 = vld [vmem:[%s1994_s3] sm:$0xff]  ;;  %v1716_v61 = vld [vmem:[%s1994_s3 + $0x10] sm:$0xff]  ;;  %vm534_vm6 = vcmask 257024   ;;  %vm1106_vm7 = vcmask 1044484   ;;  %vm1108_vm8 = vcmask 1045509  }
  0x39   : > { %252 = vmax.xlane.f32.xlu0 %v251_v7  ;;  %v254_v11 = vmax.f32 %v1676_v8, %v1678_v9  ;;  %v1688_v14 = vsub.s32 0, %v1685_v13  ;;  %v1695_v17 = vsub.s32 1, %v1685_v13  ;;  %v1699_v20 = vsub.s32 2, %v1685_v13  ;;  %v1336_v7 = vld [vmem:[%s1993_s2] ss:$0 sm:$0xff]  ;;  %s242_s29 = scalar_lea.vmem [#allocation5], %s1334_s25 }
  0x3a   : > { %v1703_v22 = vsub.s32 3, %v1685_v13  ;;  %v589_v3 = vsub.s32 4, %v1685_v13  ;;  %vm1110_vm9 = vcmask 1046534   ;;  %vm1112_vm10 = vcmask 1047559   ;;  %s1254_s12 = sshll.u32 %s242_s29, 4  ;;  %s1349_s14 = sshll.u32 %s1575_s22, 10  ;;  %s1940_s12 = int_to_ptr.vmem [resolvable:$true] %s1254_s12 }
  0x3b   : > { %v274_v16 = vrot.slane %v263_v15, %v1688_v14  ;;  %v293_v19 = vrot.slane %v263_v15, %v1695_v17  ;;  %v312_v21 = vrot.slane %v263_v15, %v1699_v20  ;;  %v576_v59 = vrot.slane %v1709_v56, %v1699_v20  ;;  %s1947_s16 = scalar_lea.hbm %s1996_s5, %s1349_s14  ;;  %s1241_s22 = scalar_lea.sflag [#allocation4], %s1650_s23 }
  0x3c   : > { %261 = vmax.xlane.f32.xlu1 %v260_v10  ;;  %v331_v23 = vrot.slane %v263_v15, %v1703_v22  ;;  %v695_v63 = vrot.slane %v1716_v61, %v1703_v22  ;;  %v590_v10 = vrot.slane %v1709_v56, %v589_v3  ;;  %v702_v15 = vrot.slane %v1716_v61, %v589_v3  ;;  %s1451_s8 = scalar_lea.vmem %s1940_s12, 1024  ;;  %p2005_p11 = scmp.ne.s32.totalorder %s2001_s30, 0 }
  0x3d   : > { %255 = vmax.xlane.f32.xlu0 %v254_v11  ;;  %v562_v11 = vrot.slane %v1709_v56, %v1688_v14  ;;  %v569_v18 = vrot.slane %v1709_v56, %v1695_v17  ;;  %vm1139_vm11 = vcmask 31744   ;;  %p1452_p10 = scmp.ne.s32.totalorder %s1940_s12, %s1451_s8  ;;  %s1521_s7 = smov [#allocation5]  }
  0x3e   : > { %s1455_s9 = sshll.u32 %s1521_s7, 4  ;;  %s1456_s9 = int_to_ptr.vmem [resolvable:$false] %s1455_s9 }
  0x3f   : > { %p1453_p12 = pnand %p1452_p10, %p2005_p11  ;;  %s1457_s10 = scalar_lea.vmem %s1456_s9, 2048 }
  0x40   : > { %p1458_p5 = scmp.lt.s32.totalorder %s1940_s12, %s1456_s9  ;;  %p1459_p7 = scmp.lt.s32.totalorder %s1457_s10, %s1451_s8 }
  0x41   : > { %p1454_p4 = pneg %p1453_p12 }
  0x42   : > { %p1460_p8 = por %p1459_p7, %p1458_p5 }
  0x44   : > { %p1461_p9 = pnand %p1460_p8, %p1454_p4 }
  0x4d   : > { %280 = vbcast.lane.b32.xlu1 %v274_v16, 264 }
  0x51   : > { %295 = vbcast.lane.b32.xlu1 %v293_v19, 256 }
  0x53   : > { %276 = vbcast.lane.b32.xlu0 %v274_v16, 256 }
  0x55   : > { %299 = vbcast.lane.b32.xlu1 %v293_v19, 264 }
  0x57   : > { %284 = vbcast.lane.b32.xlu0 %v274_v16, 272 }
  0x59   : > { %303 = vbcast.lane.b32.xlu1 %v293_v19, 272 }
  0x5b   : > { %314 = vbcast.lane.b32.xlu0 %v312_v21, 256 }
  0x5d   : > { %318 = vbcast.lane.b32.xlu1 %v312_v21, 264 }
  0x5f   : > { %288 = vbcast.lane.b32.xlu0 %v274_v16, 280  ;;  %v1729_v16 = vsub.s32 5, %v1685_v13 }
  0x61   : > { %307 = vbcast.lane.b32.xlu1 %v293_v19, 280  ;;  %v266_v19 = vld [vmem:[%s1994_s3 + $0x8] sm:$0xff] }
  0x63   : > { %322 = vbcast.lane.b32.xlu0 %v312_v21, 272 }
  0x65   : > { %333 = vbcast.lane.b32.xlu1 %v331_v23, 256 }
  0x67   : > { %337 = vbcast.lane.b32.xlu0 %v331_v23, 264 }
  0x69   : > { %326 = vbcast.lane.b32.xlu1 %v312_v21, 280  ;;  %v597_v21 = vrot.slane %v1709_v56, %v1729_v16 }
  0x6b   : > { %341 = vbcast.lane.b32.xlu0 %v331_v23, 272 }
  0x6d   : > { %345 = vbcast.lane.b32.xlu1 %v331_v23, 280  ;;  %v618_v23 = vrot.slane %v266_v19, %v1688_v14 }
  0xc1   : > { %v259_v24 = vpop.xlane.xlu1 %258 }
  0xc2   : > { %v253_v25 = vpop.xlane.xlu0 %252 }
  0xc5   : > { %v262_v26 = vpop.xlane.xlu1 %261 }
  0xc6   : > { %v256_v27 = vpop.xlane.xlu0 %255 }
  0xc9   : > { %v281_v28 = vpop.permute.xlu1 %280 }
  0xca   : > { %v364_v29 = vmul.f32 %v281_v28, %v256_v27  ;;  %v277_v30 = vpop.permute.xlu0 %276 }
  0xcb   : > { %v363_v31 = vmul.f32 %v277_v30, %v253_v25  ;;  %v632_v30 = vrot.slane %v266_v19, %v1699_v20 }
  0xcc   : > { %399 = vperm.xlu1 %1402, %v364_v29  }
  0xcd   : > { %396 = vperm.xlu0 %1401, %v363_v31   ;;  %v296_v32 = vpop.permute.xlu1 %295  ;;  %v688_v31 = vrot.slane %v1716_v61, %v1699_v20 }
  0xce   : > { %v367_v33 = vmul.f32 %v296_v32, %v253_v25  ;;  %v285_v34 = vpop.permute.xlu0 %284 }
  0xcf   : > { %v365_v36 = vmul.f32 %v285_v34, %v259_v24  ;;  %v646_v34 = vrot.slane %v266_v19, %v589_v3 }
  0xd0   : > { %408 = vperm.xlu1 %1402, %v367_v33   ;;  %v583_v33 = vrot.slane %v1709_v56, %v1703_v22 }
  0xd1   : > { %v300_v35 = vpop.permute.xlu1 %299 }
  0xd2   : > { %v368_v37 = vmul.f32 %v300_v35, %v256_v27  ;;  %v315_v38 = vpop.permute.xlu0 %314 }
  0xd3   : > { %v371_v40 = vmul.f32 %v315_v38, %v253_v25 }
  0xd4   : > { %411 = vperm.xlu0 %1401, %v368_v37   ;;  %402 = vperm.xlu1 %1402, %v365_v36   ;;  %v653_v36 = vrot.slane %v266_v19, %v1729_v16  ;;  %v1760_v37 = vsub.s32 6, %v1685_v13 }
  0xd5   : > { %v304_v39 = vpop.permute.xlu1 %303 }
  0xd6   : > { %v369_v41 = vmul.f32 %v304_v39, %v259_v24  ;;  %v289_v42 = vpop.permute.xlu0 %288  ;;  %v660_v38 = vrot.slane %v266_v19, %v1760_v37 }
  0xd7   : > { %v366_v44 = vmul.f32 %v289_v42, %v262_v26 }
  0xd8   : > { %414 = vperm.xlu0 %1401, %v369_v41   ;;  %420 = vperm.xlu1 %1402, %v371_v40  }
  0xd9   : > { %v319_v43 = vpop.permute.xlu1 %318 }
  0xda   : > { %v372_v45 = vmul.f32 %v319_v43, %v256_v27  ;;  %v323_v46 = vpop.permute.xlu0 %322 }
  0xdb   : > { %v373_v48 = vmul.f32 %v323_v46, %v259_v24 }
  0xdc   : > { %423 = vperm.xlu0 %1401, %v372_v45   ;;  %405 = vperm.xlu1 %1402, %v366_v44  }
  0xdd   : > { %v308_v47 = vpop.permute.xlu1 %307 }
  0xde   : > { %v370_v49 = vmul.f32 %v308_v47, %v262_v26  ;;  %v338_v50 = vpop.permute.xlu0 %337 }
  0xdf   : > { %v376_v52 = vmul.f32 %v338_v50, %v256_v27  ;;  %v268_v27 = vld [vmem:[%s1994_s3 + $0x18] sm:$0xff] }
  0xe0   : > { %417 = vperm.xlu0 %1401, %v370_v49   ;;  %426 = vperm.xlu1 %1402, %v373_v48   ;;  %v730_v28 = vrot.slane %v268_v27, %v1688_v14  ;;  %v737_v29 = vrot.slane %v268_v27, %v1695_v17  ;;  %v744_v32 = vrot.slane %v268_v27, %v1699_v20  ;;  %v444_v49 = vand.u32 127, %v271_v12 }
  0xe1   : > { %v334_v51 = vpop.permute.xlu1 %333  ;;  %v758_v35 = vrot.slane %v268_v27, %v589_v3  ;;  %v765_v20 = vrot.slane %v268_v27, %v1729_v16  ;;  %v772_v39 = vrot.slane %v268_v27, %v1760_v37 }
  0xe2   : > { %v375_v53 = vmul.f32 %v334_v51, %v253_v25  ;;  %v342_v54 = vpop.permute.xlu0 %341  ;;  %v674_v25 = vrot.slane %v1716_v61, %v1688_v14  ;;  %v639_v14 = vrot.slane %v266_v19, %v1703_v22 }
  0xe3   : > { %v377_v57 = vmul.f32 %v342_v54, %v259_v24  ;;  %v625_v24 = vrot.slane %v266_v19, %v1695_v17 }
  0xe4   : > { %432 = vperm.xlu0 %1401, %v375_v53   ;;  %435 = vperm.xlu1 %1402, %v376_v52   ;;  %v449_v52 = vadd.s32 4294967288, %v444_v49  ;;  %v456_v53 = vadd.s32 4294967280, %v444_v49 }
  0xe5   : > { %v327_v55 = vpop.permute.xlu1 %326 }
  0xe6   : > { %v374_v58 = vmul.f32 %v327_v55, %v262_v26 }
  0xe8   : > { %429 = vperm.xlu0 %1401, %v374_v58   ;;  %438 = vperm.xlu1 %1402, %v377_v57   ;;  %v463_v57 = vadd.s32 4294967272, %v444_v49  ;;  %v452_v58 = vsub.s32 %v449_v52, %v1685_v13 }
  0xe9   : > { %v346_v60 = vpop.permute.xlu1 %345 }
  0xea   : > { %v378_v62 = vmul.f32 %v346_v60, %v262_v26  ;;  %v681_v26 = vrot.slane %v1716_v61, %v1695_v17  ;;  %v751_v17 = vrot.slane %v268_v27, %v1703_v22  ;;  %v1765_v22 = vsub.s32 7, %v1685_v13 }
  0xeb   : > { %v459_v60 = vsub.s32 %v456_v53, %v1685_v13 }
  0xec   : > { %441 = vperm.xlu0 %1401, %v378_v62   ;;  %578 = vbcast.lane.b32.xlu1 %v576_v59, 256  ;;  %v667_v40 = vrot.slane %v266_v19, %v1765_v22  ;;  %v779_v41 = vrot.slane %v268_v27, %v1765_v22  ;;  %v1772_v59 = vsub.s32 %v444_v49, %v1685_v13 }
  0xed   : > { %v716_v49 = vrot.slane %v1716_v61, %v1760_v37 }
  0xf0   : > { %697 = vbcast.lane.b32.xlu1 %v695_v63, 256  ;;  %544 = vbcast.lane.b32.xlu0 %v1336_v7, 256  ;;  %v466_v7 = vsub.s32 %v463_v57, %v1685_v13 }
  0xf4   : > { %592 = vbcast.lane.b32.xlu1 %v590_v10, 256  ;;  %564 = vbcast.lane.b32.xlu0 %v562_v11, 256 }
  0xf8   : > { %704 = vbcast.lane.b32.xlu1 %v702_v15, 256  ;;  %571 = vbcast.lane.b32.xlu0 %v569_v18, 256 }
  0xfc   : > { %599 = vbcast.lane.b32.xlu1 %v597_v21, 256  ;;  %620 = vbcast.lane.b32.xlu0 %v618_v23, 256 }
 0x100   : > { %627 = vbcast.lane.b32.xlu0 %v625_v24, 256 }
 0x104   : > { %676 = vbcast.lane.b32.xlu0 %v674_v25, 256 }
 0x108   : > { %683 = vbcast.lane.b32.xlu0 %v681_v26, 256 }
 0x10c   : > { %732 = vbcast.lane.b32.xlu0 %v730_v28, 256 }
 0x110   : > { %739 = vbcast.lane.b32.xlu0 %v737_v29, 256 }
 0x114   : > { %634 = vbcast.lane.b32.xlu0 %v632_v30, 256 }
 0x118   : > { %690 = vbcast.lane.b32.xlu0 %v688_v31, 256 }
 0x11c   : > { %746 = vbcast.lane.b32.xlu0 %v744_v32, 256 }
 0x120   : > { %585 = vbcast.lane.b32.xlu0 %v583_v33, 256 }
 0x124   : > { %641 = vbcast.lane.b32.xlu0 %v639_v14, 256 }
 0x128   : > { %753 = vbcast.lane.b32.xlu0 %v751_v17, 256 }
 0x12c   : > { %648 = vbcast.lane.b32.xlu0 %v646_v34, 256 }
 0x130   : > { %760 = vbcast.lane.b32.xlu0 %v758_v35, 256 }
 0x134   : > { %655 = vbcast.lane.b32.xlu0 %v653_v36, 256 }
 0x138   : > { %767 = vbcast.lane.b32.xlu0 %v765_v20, 256 }
 0x13c   : > { %662 = vbcast.lane.b32.xlu0 %v660_v38, 256 }
 0x140   : > { %774 = vbcast.lane.b32.xlu0 %v772_v39, 256 }
 0x144   : > { %669 = vbcast.lane.b32.xlu0 %v667_v40, 256 }
 0x147   : > { %v400_v42 = vpop.permute.xlu1 %399 }
 0x148   : > { %781 = vbcast.lane.b32.xlu0 %v779_v41, 256  ;;  %v397_v43 = vpop.permute.xlu0 %396  ;;  %v453_v15 = vrot.slane %v400_v42, %v452_v58 }
 0x149   : > { %v448_v18 = vrot.slane %v397_v43, %v1772_v59 }
 0x14b   : > { %v409_v44 = vpop.permute.xlu1 %408  ;;  %v455_v14 = vsel %vm454_vm0, %v453_v15, %v448_v18 }
 0x14c   : > { %v473_v12 = vrot.slane %v409_v44, %v1772_v59 }
 0x14f   : > { %v403_v45 = vpop.permute.xlu1 %402  ;;  %v412_v46 = vpop.permute.xlu0 %411 }
 0x150   : > { %v477_v62 = vrot.slane %v412_v46, %v452_v58  ;;  %v460_v23 = vrot.slane %v403_v45, %v459_v60 }
 0x152   : > { %v478_v24 = vsel %vm454_vm0, %v477_v62, %v473_v12  ;;  %v462_v35 = vsel %vm461_vm1, %v460_v23, %v455_v14 }
 0x153   : > { %v421_v47 = vpop.permute.xlu1 %420  ;;  %v415_v48 = vpop.permute.xlu0 %414 }
 0x154   : > { %v482_v10 = vrot.slane %v415_v48, %v459_v60  ;;  %v492_v25 = vrot.slane %v421_v47, %v1772_v59  ;;  %v709_v47 = vrot.slane %v1716_v61, %v1729_v16  ;;  %v604_v48 = vrot.slane %v1709_v56, %v1760_v37 }
 0x156   : > { %v483_v31 = vsel %vm461_vm1, %v482_v10, %v478_v24 }
 0x157   : > { %v406_v50 = vpop.permute.xlu1 %405  ;;  %v424_v51 = vpop.permute.xlu0 %423 }
 0x158   : > { %v496_v11 = vrot.slane %v424_v51, %v452_v58  ;;  %v467_v28 = vrot.slane %v406_v50, %v466_v7  ;;  %v611_v50 = vrot.slane %v1709_v56, %v1765_v22  ;;  %v723_v51 = vrot.slane %v1716_v61, %v1765_v22 }
 0x15a   : > { %v497_v32 = vsel %vm454_vm0, %v496_v11, %v492_v25  ;;  %v469_v38 = vsel %vm468_vm2, %v467_v28, %v462_v35 }
 0x15b   : > { %v427_v54 = vpop.permute.xlu1 %426  ;;  %v418_v55 = vpop.permute.xlu0 %417 }
 0x15c   : > { %v501_v19 = vrot.slane %v427_v54, %v459_v60  ;;  %v487_v21 = vrot.slane %v418_v55, %v466_v7 }
 0x15e   : > { %v502_v17 = vsel %vm461_vm1, %v501_v19, %v497_v32  ;;  %v488_v34 = vsel %vm468_vm2, %v487_v21, %v483_v31 }
 0x15f   : > { %v436_v63 = vpop.permute.xlu1 %435  ;;  %v433_v3 = vpop.permute.xlu0 %432  ;;  %v528_v42 = vsel %vm527_vm3, %v488_v34, %v469_v38 }
 0x160   : > { %v515_v13 = vrot.slane %v436_v63, %v452_v58  ;;  %v511_v29 = vrot.slane %v433_v3, %v1772_v59 }
 0x162   : > { %v516_v39 = vsel %vm454_vm0, %v515_v13, %v511_v29 }
 0x163   : > { %v439_v26 = vpop.permute.xlu1 %438  ;;  %v430_v27 = vpop.permute.xlu0 %429 }
 0x164   : > { %v506_v30 = vrot.slane %v430_v27, %v466_v7  ;;  %v520_v33 = vrot.slane %v439_v26, %v459_v60 }
 0x166   : > { %v507_v36 = vsel %vm468_vm2, %v506_v30, %v502_v17  ;;  %v521_v41 = vsel %vm461_vm1, %v520_v33, %v516_v39 }
 0x167   : > { %v442_v20 = vpop.permute.xlu0 %441  ;;  %v530_v44 = vsel %vm529_vm4, %v507_v36, %v528_v42  ;;  %v579_v16 = vpop.permute.xlu1 %578 }
 0x168   : > { %v525_v40 = vrot.slane %v442_v20, %v466_v7 }
 0x16a   : > { %v526_v43 = vsel %vm468_vm2, %v525_v40, %v521_v41 }
 0x16b   : > { %v532_v45 = vsel %vm531_vm5, %v526_v43, %v530_v44  ;;  %v545_v52 = vpop.permute.xlu0 %544  ;;  %v698_v55 = vpop.permute.xlu1 %697 }
 0x16c   : > { %v535_v46 = vsel %vm534_vm6, %v532_v45, 0.0 }
 0x16d   : > { %536 = vadd.xlane.f32.xlu1 %v535_v46 }
 0x16f   : > { %v565_v53 = vpop.permute.xlu0 %564  ;;  %v593_v58 = vpop.permute.xlu1 %592 }
 0x173   : > { %v572_v54 = vpop.permute.xlu0 %571  ;;  %v705_v62 = vpop.permute.xlu1 %704 }
 0x177   : > { %v621_v57 = vpop.permute.xlu0 %620  ;;  %v1805_v37 = vpop.permute.xlu1 %599 }
 0x17b   : > { %v628_v60 = vpop.permute.xlu0 %627 }
 0x17e   : > { %711 = vbcast.lane.b32.xlu1 %v709_v47, 256 }
 0x17f   : > { %v677_v63 = vpop.permute.xlu0 %676 }
 0x182   : > { %606 = vbcast.lane.b32.xlu1 %v604_v48, 256 }
 0x183   : > { %v684_v3 = vpop.permute.xlu0 %683 }
 0x186   : > { %718 = vbcast.lane.b32.xlu1 %v716_v49, 256 }
 0x187   : > { %v733_v10 = vpop.permute.xlu0 %732 }
 0x18a   : > { %613 = vbcast.lane.b32.xlu1 %v611_v50, 256 }
 0x18b   : > { %v740_v61 = vpop.permute.xlu0 %739 }
 0x18e   : > { %725 = vbcast.lane.b32.xlu1 %v723_v51, 256 }
 0x18f   : > { %v635_v22 = vpop.permute.xlu0 %634 }
 0x193   : > { %v691_v18 = vpop.permute.xlu0 %690 }
 0x197   : > { %v747_v19 = vpop.permute.xlu0 %746 }
 0x19b   : > { %v586_v23 = vpop.permute.xlu0 %585 }
 0x19f   : > { %v642_v28 = vpop.permute.xlu0 %641 }
 0x1a3   : > { %v754_v31 = vpop.permute.xlu0 %753 }
 0x1a7   : > { %v649_v17 = vpop.permute.xlu0 %648 }
 0x1ab   : > { %v761_v20 = vpop.permute.xlu0 %760 }
 0x1af   : > { %v656_v41 = vpop.permute.xlu0 %655 }
 0x1b3   : > { %v768_v46 = vpop.permute.xlu0 %767 }
 0x1b7   : > { %v663_v51 = vpop.permute.xlu0 %662 }
 0x1f6   : > { %v537_v7 = vpop.xlane.xlu1 %536 }
 0x1f7   : > { %v547_v56 = vadd.f32 %v545_v52, %v537_v7 }
 0x1f9   : > { %v1337_v12 = vmul.f32 -1.442695, %v547_v56 }
 0x1fa   : > { %v712_v45 = vpop.permute.xlu1 %711 }
 0x1fb   : > { %1403 = vpow2.f32 %v1337_v12 }
 0x1fe   : > { %v607_v49 = vpop.permute.xlu1 %606 }
 0x208   : > { %v1404_v11 = vpop.eup %1403 }
 0x209   : > { %v551_v15 = vadd.f32 1.0, %v1404_v11 }
 0x20b   : > { %1405 = vrcp.f32 %v551_v15 }
 0x218   : > { %v1406_v21 = vpop.eup %1405 }
 0x219   : > { %v1807_v24 = vmul.f32 %v1406_v21, %v547_v56 }
 0x21b   : > { %v815_v25 = vmul.f32 %v565_v53, %v1807_v24  ;;  %v816_v26 = vmul.f32 %v572_v54, %v1807_v24  ;;  %v823_v27 = vmul.f32 %v621_v57, %v1807_v24  ;;  %v824_v13 = vmul.f32 %v628_v60, %v1807_v24  ;;  %v719_v54 = vpop.permute.xlu1 %718 }
 0x21c   : > { %v831_v29 = vmul.f32 %v677_v63, %v1807_v24  ;;  %v832_v30 = vmul.f32 %v684_v3, %v1807_v24  ;;  %v839_v32 = vmul.f32 %v733_v10, %v1807_v24  ;;  %v840_v33 = vmul.f32 %v740_v61, %v1807_v24 }
 0x21d   : > { %880 = vperm.xlu1 %1402, %v815_v25   ;;  %883 = vperm.xlu0 %1401, %v816_v26   ;;  %v817_v14 = vmul.f32 %v579_v16, %v1807_v24  ;;  %v825_v34 = vmul.f32 %v635_v22, %v1807_v24  ;;  %v833_v35 = vmul.f32 %v691_v18, %v1807_v24  ;;  %v1845_v22 = vld [vmem:[%s1995_s4] ss:$0 sm:$0xff] }
 0x21e   : > { %v841_v36 = vmul.f32 %v747_v19, %v1807_v24  ;;  %v818_v38 = vmul.f32 %v586_v23, %v1807_v24  ;;  %v826_v39 = vmul.f32 %v642_v28, %v1807_v24  ;;  %v834_v40 = vmul.f32 %v698_v55, %v1807_v24  ;;  %v775_v55 = vpop.permute.xlu0 %774 }
 0x21f   : > { %v842_v42 = vmul.f32 %v754_v31, %v1807_v24  ;;  %v819_v43 = vmul.f32 %v593_v58, %v1807_v24  ;;  %v827_v44 = vmul.f32 %v649_v17, %v1807_v24  ;;  %v835_v47 = vmul.f32 %v705_v62, %v1807_v24  ;;  %v614_v60 = vpop.permute.xlu1 %613 }
 0x220   : > { %v843_v48 = vmul.f32 %v761_v20, %v1807_v24  ;;  %v820_v50 = vmul.f32 %v1805_v37, %v1807_v24  ;;  %v828_v52 = vmul.f32 %v656_v41, %v1807_v24  ;;  %v836_v53 = vmul.f32 %v712_v45, %v1807_v24 }
 0x221   : > { %904 = vperm.xlu1 %1402, %v823_v27   ;;  %907 = vperm.xlu0 %1401, %v824_v13   ;;  %v844_v16 = vmul.f32 %v768_v46, %v1807_v24  ;;  %v821_v57 = vmul.f32 %v607_v49, %v1807_v24  ;;  %v829_v58 = vmul.f32 %v663_v51, %v1807_v24 }
 0x222   : > { %v837_v62 = vmul.f32 %v719_v54, %v1807_v24  ;;  %v670_v63 = vpop.permute.xlu0 %669  ;;  %v845_v37 = vmul.f32 %v775_v55, %v1807_v24  ;;  %v822_v3 = vmul.f32 %v614_v60, %v1807_v24 }
 0x223   : > { %v830_v7 = vmul.f32 %v670_v63, %v1807_v24  ;;  %v726_v56 = vpop.permute.xlu1 %725 }
 0x224   : > { %v838_v10 = vmul.f32 %v726_v56, %v1807_v24 }
 0x225   : > { %928 = vperm.xlu1 %1402, %v831_v29   ;;  %931 = vperm.xlu0 %1401, %v832_v30  }
 0x226   : > { %v782_v12 = vpop.permute.xlu0 %781 }
 0x227   : > { %v846_v61 = vmul.f32 %v782_v12, %v1807_v24 }
 0x229   : > { %952 = vperm.xlu1 %1402, %v839_v32   ;;  %955 = vperm.xlu0 %1401, %v840_v33  }
 0x22d   : > { %886 = vperm.xlu1 %1402, %v817_v14   ;;  %910 = vperm.xlu0 %1401, %v825_v34  }
 0x231   : > { %934 = vperm.xlu1 %1402, %v833_v35   ;;  %958 = vperm.xlu0 %1401, %v841_v36  }
 0x235   : > { %889 = vperm.xlu1 %1402, %v818_v38   ;;  %913 = vperm.xlu0 %1401, %v826_v39  }
 0x239   : > { %937 = vperm.xlu1 %1402, %v834_v40   ;;  %961 = vperm.xlu0 %1401, %v842_v42  }
 0x23d   : > { %892 = vperm.xlu1 %1402, %v819_v43   ;;  %916 = vperm.xlu0 %1401, %v827_v44  }
 0x241   : > { %940 = vperm.xlu1 %1402, %v835_v47   ;;  %964 = vperm.xlu0 %1401, %v843_v48  }
 0x245   : > { %895 = vperm.xlu1 %1402, %v820_v50   ;;  %919 = vperm.xlu0 %1401, %v828_v52  }
 0x249   : > { %943 = vperm.xlu1 %1402, %v836_v53   ;;  %967 = vperm.xlu0 %1401, %v844_v16  }
 0x24d   : > { %898 = vperm.xlu1 %1402, %v821_v57   ;;  %922 = vperm.xlu0 %1401, %v829_v58  }
 0x251   : > { %946 = vperm.xlu1 %1402, %v837_v62   ;;  %970 = vperm.xlu0 %1401, %v845_v37  }
 0x255   : > { %901 = vperm.xlu1 %1402, %v822_v3   ;;  %925 = vperm.xlu0 %1401, %v830_v7  }
 0x259   : > { %949 = vperm.xlu1 %1402, %v838_v10   ;;  %973 = vperm.xlu0 %1401, %v846_v61  }
 0x25d   : > { %1162 = vbcast.lane.b32.xlu1 %v1845_v22, 264  ;;  %1158 = vbcast.lane.b32.xlu0 %v1845_v22, 256 }
 0x298   : > { %v881_v11 = vpop.permute.xlu1 %880  ;;  %v884_v15 = vpop.permute.xlu0 %883 }
 0x299   : > { %v978_v39 = vrot.slane %v881_v11, %v1772_v59  ;;  %v982_v40 = vrot.slane %v884_v15, %v1772_v59 }
 0x29b   : > { %v1103_v16 = vsel %vm527_vm3, %v982_v40, %v978_v39 }
 0x29c   : > { %v905_v18 = vpop.permute.xlu1 %904  ;;  %v908_v19 = vpop.permute.xlu0 %907 }
 0x29d   : > { %v1010_v41 = vrot.slane %v905_v18, %v1772_v59  ;;  %v1014_v42 = vrot.slane %v908_v19, %v1772_v59 }
 0x29f   : > { %v1114_v54 = vsel %vm527_vm3, %v1014_v42, %v1010_v41 }
 0x2a0   : > { %v929_v21 = vpop.permute.xlu1 %928  ;;  %v932_v23 = vpop.permute.xlu0 %931 }
 0x2a1   : > { %v1042_v43 = vrot.slane %v929_v21, %v1772_v59  ;;  %v1046_v44 = vrot.slane %v932_v23, %v1772_v59 }
 0x2a3   : > { %v1121_v57 = vsel %vm527_vm3, %v1046_v44, %v1042_v43 }
 0x2a4   : > { %v953_v25 = vpop.permute.xlu1 %952  ;;  %v956_v26 = vpop.permute.xlu0 %955 }
 0x2a5   : > { %v1074_v45 = vrot.slane %v953_v25, %v1772_v59  ;;  %v1078_v46 = vrot.slane %v956_v26, %v1772_v59 }
 0x2a7   : > { %v1128_v58 = vsel %vm527_vm3, %v1078_v46, %v1074_v45 }
 0x2a8   : > { %v887_v24 = vpop.permute.xlu1 %886  ;;  %v911_v27 = vpop.permute.xlu0 %910 }
 0x2a9   : > { %v986_v48 = vrot.slane %v887_v24, %v1772_v59  ;;  %v1018_v49 = vrot.slane %v911_v27, %v1772_v59 }
 0x2ab   : > { %v1104_v37 = vsel %vm529_vm4, %v986_v48, %v1103_v16  ;;  %v1115_v3 = vsel %vm529_vm4, %v1018_v49, %v1114_v54 }
 0x2ac   : > { %v935_v28 = vpop.permute.xlu1 %934  ;;  %v959_v13 = vpop.permute.xlu0 %958 }
 0x2ad   : > { %v1050_v51 = vrot.slane %v935_v28, %v1772_v59  ;;  %v1082_v52 = vrot.slane %v959_v13, %v1772_v59 }
 0x2af   : > { %v1122_v10 = vsel %vm529_vm4, %v1050_v51, %v1121_v57  ;;  %v1129_v61 = vsel %vm529_vm4, %v1082_v52, %v1128_v58 }
 0x2b0   : > { %v890_v29 = vpop.permute.xlu1 %889  ;;  %v914_v30 = vpop.permute.xlu0 %913 }
 0x2b1   : > { %v990_v53 = vrot.slane %v890_v29, %v1772_v59  ;;  %v1022_v55 = vrot.slane %v914_v30, %v1772_v59 }
 0x2b3   : > { %v1105_v11 = vsel %vm531_vm5, %v990_v53, %v1104_v37  ;;  %v1116_v18 = vsel %vm531_vm5, %v1022_v55, %v1115_v3 }
 0x2b4   : > { %v1849_v31 = vpop.permute.xlu1 %937  ;;  %v1851_v32 = vpop.permute.xlu0 %961 }
 0x2b5   : > { %v1054_v19 = vrot.slane %v1849_v31, %v1772_v59  ;;  %v1086_v21 = vrot.slane %v1851_v32, %v1772_v59 }
 0x2b7   : > { %v1130_v40 = vsel %vm531_vm5, %v1086_v21, %v1129_v61 }
 0x2b8   : > { %v893_v33 = vpop.permute.xlu1 %892  ;;  %v917_v14 = vpop.permute.xlu0 %916 }
 0x2b9   : > { %v994_v60 = vrot.slane %v893_v33, %v1772_v59  ;;  %v1026_v62 = vrot.slane %v917_v14, %v1772_v59 }
 0x2bb   : > { %v1107_v25 = vsel %vm1106_vm7, %v994_v60, %v1105_v11  ;;  %v1117_v26 = vsel %vm1106_vm7, %v1026_v62, %v1116_v18 }
 0x2bc   : > { %v1853_v17 = vpop.permute.xlu1 %940  ;;  %v1855_v34 = vpop.permute.xlu0 %964 }
 0x2bd   : > { %v1058_v24 = vrot.slane %v1853_v17, %v1772_v59  ;;  %v1090_v27 = vrot.slane %v1855_v34, %v1772_v59 }
 0x2bf   : > { %v1131_v44 = vsel %vm1106_vm7, %v1090_v27, %v1130_v40 }
 0x2c0   : > { %v896_v35 = vpop.permute.xlu1 %895  ;;  %v920_v36 = vpop.permute.xlu0 %919 }
 0x2c1   : > { %v998_v7 = vrot.slane %v896_v35, %v1772_v59  ;;  %v1030_v56 = vrot.slane %v920_v36, %v1772_v59  ;;  %v1123_v35 = vsel %vm531_vm5, %v1054_v19, %v1122_v10 }
 0x2c2   : > { %v1124_v41 = vsel %vm1106_vm7, %v1058_v24, %v1123_v35 }
 0x2c3   : > { %v1109_v13 = vsel %vm1108_vm8, %v998_v7, %v1107_v25  ;;  %v1118_v29 = vsel %vm1108_vm8, %v1030_v56, %v1117_v26 }
 0x2c4   : > { %v1857_v20 = vpop.permute.xlu1 %943  ;;  %v1859_v38 = vpop.permute.xlu0 %967 }
 0x2c5   : > { %v1062_v30 = vrot.slane %v1857_v20, %v1772_v59  ;;  %v1094_v33 = vrot.slane %v1859_v38, %v1772_v59 }
 0x2c7   : > { %v1125_v45 = vsel %vm1108_vm8, %v1062_v30, %v1124_v41  ;;  %v1132_v49 = vsel %vm1108_vm8, %v1094_v33, %v1131_v44 }
 0x2c8   : > { %v899_v47 = vpop.permute.xlu1 %898  ;;  %v923_v50 = vpop.permute.xlu0 %922 }
 0x2c9   : > { %v1002_v15 = vrot.slane %v899_v47, %v1772_v59  ;;  %v1034_v23 = vrot.slane %v923_v50, %v1772_v59 }
 0x2cb   : > { %v1111_v34 = vsel %vm1110_vm9, %v1002_v15, %v1109_v13  ;;  %v1119_v20 = vsel %vm1110_vm9, %v1034_v23, %v1118_v29 }
 0x2cc   : > { %v947_v63 = vpop.permute.xlu1 %946  ;;  %v971_v12 = vpop.permute.xlu0 %970 }
 0x2cd   : > { %v1066_v14 = vrot.slane %v947_v63, %v1772_v59  ;;  %v1098_v36 = vrot.slane %v971_v12, %v1772_v59 }
 0x2cf   : > { %v1126_v51 = vsel %vm1110_vm9, %v1066_v14, %v1125_v45  ;;  %v1133_v53 = vsel %vm1110_vm9, %v1098_v36, %v1132_v49 }
 0x2d0   : > { %v902_v28 = vpop.permute.xlu1 %901  ;;  %v926_v32 = vpop.permute.xlu0 %925 }
 0x2d1   : > { %v1006_v31 = vrot.slane %v902_v28, %v1772_v59  ;;  %v1038_v17 = vrot.slane %v926_v32, %v1772_v59 }
 0x2d3   : > { %v1113_v39 = vsel %vm1112_vm10, %v1006_v31, %v1111_v34  ;;  %v1120_v43 = vsel %vm1112_vm10, %v1038_v17, %v1119_v20 }
 0x2d4   : > { %v950_v42 = vpop.permute.xlu1 %949  ;;  %v1140_v38 = vsel %vm1139_vm11, %v1113_v39, 0.0  ;;  %v974_v47 = vpop.permute.xlu0 %973  ;;  %v1143_v48 = vsel %vm1139_vm11, %v1120_v43, 0.0 }
 0x2d5   : > { %v1070_v46 = vrot.slane %v950_v42, %v1772_v59  ;;  %1141 = vadd.xlane.f32.xlu1 %v1140_v38  ;;  %v1102_v50 = vrot.slane %v974_v47, %v1772_v59  ;;  %1144 = vadd.xlane.f32.xlu0 %v1143_v48 }
 0x2d7   : > { %v1127_v52 = vsel %vm1112_vm10, %v1070_v46, %v1126_v51  ;;  %v1134_v54 = vsel %vm1112_vm10, %v1102_v50, %v1133_v53 }
 0x2d8   : > { %v1146_v16 = vsel %vm1139_vm11, %v1127_v52, 0.0  ;;  %v1149_v55 = vsel %vm1139_vm11, %v1134_v54, 0.0  ;;  %v1163_v59 = vpop.permute.xlu1 %1162  ;;  %v1159_v57 = vpop.permute.xlu0 %1158 }
 0x2d9   : > { %1147 = vadd.xlane.f32.xlu0 %v1146_v16  ;;  %1150 = vadd.xlane.f32.xlu1 %v1149_v55 }
 0x2ea   : > { %1166 = vbcast.lane.b32.xlu1 %v1845_v22, 272 }
 0x2ef   : > { %1170 = vbcast.lane.b32.xlu0 %v1845_v22, 280 }
 0x35e   : > { %v1142_v58 = vpop.xlane.xlu1 %1141  ;;  %v1145_v62 = vpop.xlane.xlu0 %1144 }
 0x35f   : > { %v1176_v60 = vadd.f32 %v1159_v57, %v1142_v58  ;;  %v1177_v63 = vadd.f32 %v1163_v59, %v1145_v62 }
 0x361   : > { %v1339_v37 = vmul.f32 -1.442695, %v1176_v60  ;;  %v1340_v3 = vmul.f32 -1.442695, %v1177_v63 }
 0x362   : > { %v1151_v7 = vpop.xlane.xlu1 %1150  ;;  %v1148_v56 = vpop.xlane.xlu0 %1147 }
 0x363   : > { %1407 = vpow2.f32 %v1339_v37 }
 0x364   : > { %1409 = vpow2.f32 %v1340_v3 }
 0x366   : > { %v1167_v12 = vpop.permute.xlu1 %1166  ;;  %v1171_v10 = vpop.permute.xlu0 %1170 }
 0x367   : > { %v1178_v61 = vadd.f32 %v1167_v12, %v1148_v56  ;;  %v1179_v11 = vadd.f32 %v1171_v10, %v1151_v7 }
 0x369   : > { %v1341_v15 = vmul.f32 -1.442695, %v1178_v61  ;;  %v1342_v18 = vmul.f32 -1.442695, %v1179_v11 }
 0x36b   : > { %1411 = vpow2.f32 %v1341_v15 }
 0x36c   : > { %1413 = vpow2.f32 %v1342_v18 }
 0x370   : > { %v1408_v22 = vpop.eup %1407 }
 0x371   : > { %v1410_v19 = vpop.eup %1409  ;;  %v1192_v21 = vadd.f32 1.0, %v1408_v22 }
 0x372   : > { %v1193_v23 = vadd.f32 1.0, %v1410_v19 }
 0x373   : > { %1415 = vrcp.f32 %v1192_v21 }
 0x374   : > { %1417 = vrcp.f32 %v1193_v23 }
 0x378   : > { %v1412_v25 = vpop.eup %1411 }
 0x379   : > { %v1414_v26 = vpop.eup %1413  ;;  %v1194_v24 = vadd.f32 1.0, %v1412_v25 }
 0x37a   : > { %v1195_v27 = vadd.f32 1.0, %v1414_v26 }
 0x37b   : > { %1419 = vrcp.f32 %v1194_v24 }
 0x37c   : > { %1421 = vrcp.f32 %v1195_v27 }
 0x380   : > { %v1416_v28 = vpop.eup %1415 }
 0x381   : > { %v1418_v13 = vpop.eup %1417  ;;  %1206 = vperm.xlu1 %1402, %v1416_v28  }
 0x382   : > { %1211 = vperm.xlu0 %1401, %v1418_v13  }
 0x388   : > { %v1420_v29 = vpop.eup %1419 }
 0x389   : > { %v1422_v30 = vpop.eup %1421  ;;  %1216 = vperm.xlu1 %1402, %v1420_v29  }
 0x38a   : > { %1221 = vperm.xlu0 %1401, %v1422_v30  }
 0x3fc   : > { %v1207_v31 = vpop.permute.xlu1 %1206 }
 0x3fd   : > { %v1224_v32 = vmul.f32 %v1207_v31, %v1664_v2  ;;  %v1225_v33 = vmul.f32 %v1207_v31, %v1668_v4  ;;  %v1212_v14 = vpop.permute.xlu0 %1211 }
 0x3fe   : > { %v1226_v17 = vmul.f32 %v1212_v14, %v1676_v8  ;;  %v1227_v34 = vmul.f32 %v1212_v14, %v1678_v9 }
 0x3ff   : > { %1232 = vst [vmem:[%s242_s29] sm:$0xff] %v1224_v32  ;;  %1233 = vst [vmem:[%s242_s29 + $0x8] sm:$0xff] %v1225_v33 }
 0x400   : > { %1234 = vst [vmem:[%s242_s29 + $0x10] sm:$0xff] %v1226_v17  ;;  %1235 = vst [vmem:[%s242_s29 + $0x18] sm:$0xff] %v1227_v34 }
 0x404   : > { %v1217_v2 = vpop.permute.xlu1 %1216 }
 0x405   : > { %v1228_v4 = vmul.f32 %v1217_v2, %v1660_v0  ;;  %v1229_v8 = vmul.f32 %v1217_v2, %v1662_v1  ;;  %v1222_v9 = vpop.permute.xlu0 %1221 }
 0x406   : > { %v1230_v35 = vmul.f32 %v1222_v9, %v1670_v5  ;;  %v1231_v36 = vmul.f32 %v1222_v9, %v1672_v6 }
 0x407   : > { %1236 = vst [vmem:[%s242_s29 + $0x20] sm:$0xff] %v1228_v4  ;;  %1237 = vst [vmem:[%s242_s29 + $0x28] sm:$0xff] %v1229_v8 }
 0x408   : > { %1238 = vst [vmem:[%s242_s29 + $0x30] sm:$0xff] %v1230_v35  ;;  %1239 = vst [vmem:[%s242_s29 + $0x38] sm:$0xff] %v1231_v36 }
 0x409   : > { %1464 = shalt.err (!%p1461_p9)
}
 0x40a   : > { %s1465_s11 = scalar_lea.hbm %s1947_s16, 1024  ;;  %s1469_s26 = scalar_lea.hbm %s1996_s5, 4096 }
 0x40b   : > { %p1466_p13 = scmp.ne.s32.totalorder %s1947_s16, %s1465_s11  ;;  %p1470_p2 = scmp.lt.s32.totalorder %s1947_s16, %s1996_s5 }
 0x40c   : > { %p1471_p3 = scmp.lt.s32.totalorder %s1469_s26, %s1465_s11 }
 0x40d   : > { %p1467_p1 = pnand %p1466_p13, %p2005_p11 }
 0x40e   : > { %p1472_p6 = por %p1471_p3, %p1470_p2 }
 0x40f   : > { %p1468_p0 = pneg %p1467_p1 }
 0x411   : > { %p1473_p10 = pnand %p1472_p6, %p1468_p0 }
 0x413   : > { %1476 = shalt.err (!%p1473_p10)
}
 0x414   : > { %s1522_s14 = smov 256   ;;  %s1523_s15 = smov 16  }
 0x415   : > { %1352 = dma.vmem_to_hbm [thread:$0]  (%p2005_p11), %s1940_s12, 1024, %s1947_s16, %s1241_s22, %s1522_s14, %s1522_s14, %s1523_s15  }
 0x416 PF: > { %p1363_p12 = scmp.ge.s32.totalorder %s1515_s21, 2  ;;  %s1269_s25 = sand.u32 1, %s1503_s18  }
 0x417   : > { %p2006_p4 = scmp.ne.s32.totalorder %s2002_s6, 0  ;;  %s1270_s8 = scalar_lea.sflag [#allocation4], %s1269_s25 }
 0x419   : > { %p1359_p5 = pnand %p1363_p12, %p2006_p4 }
 0x41b   : > { %p1360_p7 = pneg %p1359_p5 }
 0x41d   : > { %1498 = dma.done.wait (%p1360_p7), %s1270_s8, 1024  }
 0x41e   : > { %1500 = vsyncadd (%p1360_p7), %s1270_s8, 4294966272  ;;  %p18_p8 = scmp.ge.s32.totalorder %s1579_s24, 6   ;;  %s2007_s18 = smov %s1507_s19 }
 0x41f   : > { %s2008_s19 = smov %s1511_s20  ;;  %s2009_s20 = smov %s1591_s27 }
 0x420   : > { %s2010_s21 = smov %s1579_s24  ;;  %20 = sbr.rel (!%p18_p8) target bundleno = 5 (0x5), region = 85 }
 0x425   :  { %1275 = vsyncpa [#allocation3], 1 }
 0x426   :  { %1277 = vsyncpa [#allocation3 + $0x1], 1 }
 0x427   :  { %1278 = vsyncpa [#allocation4], 1 }
 0x428   :  { %1280 = vsyncpa [#allocation4 + $0x1], 1 }

</bundles_post_ra>
